<compile_context>
chip_gen: v6e
topology: v6e:2x2x1
jax: 0.10.0
libtpu: 0.0.40
codegen_flags: <defaults>
</compile_context>

<pallas_src>
import jax
import jax.numpy as jnp
from jax import lax
from jax.experimental import pallas as pl
from jax.experimental.pallas import tpu as pltpu


def _pick_tile(n: int, cap: int) -> int:
    """Largest tile t <= cap with n % t == 0 and t % 8 == 0 (TPU sublane rule),
    falling back to the full dimension."""
    if n <= cap:
        return n
    for t in range(cap, 7, -1):
        if n % t == 0 and t % 8 == 0:
            return t
    return n


# ---------------------------------------------------------------------------
# Kernel 1: fused QKV projection, head-major output.
# grid = (B, T//tm, H), head axis innermost ("arbitrary"); the x tile's block
# index does not depend on h, so its DMA is elided across the head loop.
# One (tm, E) @ (E, 3*hs) matmul per step (scale folded into the Q columns).
# ---------------------------------------------------------------------------
def _make_qkv_kernel(hs: int):
    def kernel(x_ref, w_ref, q_ref, k_ref, v_ref):
        y = jnp.dot(x_ref[0], w_ref[0], preferred_element_type=jnp.float32)
        q_ref[0, 0] = y[:, :hs].astype(q_ref.dtype)
        k_ref[0, 0] = y[:, hs:2 * hs].astype(k_ref.dtype)
        v_ref[0, 0] = y[:, 2 * hs:].astype(v_ref.dtype)

    return kernel


# ---------------------------------------------------------------------------
# Kernel 2: flash-style causal attention, all heads batched (leading head dim),
# with the output projection (+bias) fused in.
# grid = (B, nq, nk); kv axis is the reduction ("arbitrary").
# Scratch (persist across kv steps): m (H, tq, 1), l (H, tq, 1), acc (H, tq, hs).
# ---------------------------------------------------------------------------
def _make_attention_kernel(H: int, hs: int, tq: int, tk: int):
    def kernel(q_ref, k_ref, v_ref, w_ref, b_ref, o_ref, m_ref, l_ref, acc_ref):
        qi = pl.program_id(1)
        ki = pl.program_id(2)

        @pl.when(ki == 0)
        def _():
            m_ref[...] = jnp.full_like(m_ref, -1e30)
            l_ref[...] = jnp.zeros_like(l_ref)
            acc_ref[...] = jnp.zeros_like(acc_ref)

        def scores():
            # (H, tq, hs) x (H, tk, hs) -> (H, tq, tk), heads as batch dim.
            return jnp.einsum('hqd,hkd->hqk', q_ref[0], k_ref[0],
                              preferred_element_type=jnp.float32)

        def update(s):
            m_prev = m_ref[...]                                    # (H, tq, 1)
            m_new = jnp.maximum(m_prev, jnp.max(s, axis=-1, keepdims=True))
            alpha = jnp.exp(m_prev - m_new)
            p = jnp.exp(s - m_new)
            l_ref[...] = alpha * l_ref[...] + jnp.sum(p, axis=-1, keepdims=True)
            acc_ref[...] = alpha * acc_ref[...] + jnp.einsum(
                'hqk,hkd->hqd', p.astype(v_ref.dtype), v_ref[0],
                preferred_element_type=jnp.float32)
            m_ref[...] = m_new

        # Strictly-below-diagonal kv blocks: no mask needed.
        @pl.when(ki < qi)
        def _():
            update(scores())

        # Diagonal block: causal mask, then finalize + fused output projection.
        # (Blocks with ki > qi are never computed; their DMA is also elided by
        # the clamped K/V index_map in the wrapper.)
        @pl.when(ki == qi)
        def _():
            s = scores()
            row = lax.broadcasted_iota(jnp.int32, (tq, tk), 0)
            col = lax.broadcasted_iota(jnp.int32, (tq, tk), 1)
            keep = (col <= row)[None, :, :]            # tq == tk, local mask
            update(jnp.where(keep, s, -1e30))

            # Exact normalization (runs once per q-tile; negligible cost).
            head_out = acc_ref[...] / l_ref[...]                   # (H, tq, hs)
            proj = jnp.einsum('hqd,hde->hqe', head_out, w_ref[...],
                              preferred_element_type=jnp.float32)  # (H, tq, E)
            out = jnp.sum(proj, axis=0) + b_ref[...].astype(jnp.float32)
            o_ref[0] = out.astype(o_ref.dtype)

    return kernel


# ---------------------------------------------------------------------------
# Wrapper
# ---------------------------------------------------------------------------
def multi_head_attention(x, wq, wk, wv, w_out, b_out, *, qkv_dtype=None):
    """
    x        : (B, T, E)
    wq/wk/wv : (H, E, hs)  per-head projection weights (transposed from the
                           PyTorch (hs, E) Linear layout)
    w_out    : (H*hs, E)   output projection (transposed PyTorch layout,
                           rows ordered f = d*H + h to match torch.stack(dim=3))
    b_out    : (E,)
    qkv_dtype: optional dtype for the Q/K/V intermediates (pass jnp.bfloat16 on
               bandwidth-bound v5e/v6e configs); defaults to x.dtype for parity.
    returns (B, T, E)
    """
    B, T, E = x.shape
    H, _, hs = wq.shape
    scale = 1.0 / (hs ** 0.5)
    qkv_dtype = x.dtype if qkv_dtype is None else qkv_dtype

    # ---- trace-time weight plumbing (tiny, one-off; no per-token cost) ----
    wqkv = jnp.concatenate([wq * scale, wk, wv], axis=2)          # (H, E, 3*hs)
    # PyTorch stack(dim=3).view uses feature order f = d*H + h; rearrange w_out
    # once so the head-major in-kernel accumulator maps directly onto it.
    w3 = jnp.transpose(w_out.reshape(hs, H, E), (1, 0, 2))        # (H, hs, E)
    b2 = b_out.reshape(1, E)

    # ---- Kernel 1: fused QKV projection -> head-major (B, H, T, hs) ----
    tm = _pick_tile(T, 512)
    q, k, v = pl.pallas_call(
        _make_qkv_kernel(hs),
        out_shape=[jax.ShapeDtypeStruct((B, H, T, hs), qkv_dtype)] * 3,
        grid=(B, T // tm, H),
        in_specs=[
            pl.BlockSpec((1, tm, E), lambda b, i, h: (b, i, 0)),      # x (elided over h)
            pl.BlockSpec((1, E, 3 * hs), lambda b, i, h: (h, 0, 0)),  # fused W_qkv
        ],
        out_specs=[pl.BlockSpec((1, 1, tm, hs),
                                lambda b, i, h: (b, h, i, 0))] * 3,
        compiler_params=pltpu.CompilerParams(
            dimension_semantics=("parallel", "parallel", "arbitrary"),
            vmem_limit_bytes=64 * 1024 * 1024),
    )(x, wqkv)

    # ---- Kernel 2: flash attention + fused output projection ----
    tq = _pick_tile(T, 256)
    tk = tq
    nq = T // tq
    nk = T // tk
    # Clamp K/V to the causal region: for j > i the block index repeats and the
    # pipeline elides the DMA (pl.when alone would still fetch masked blocks).
    kv_index = lambda b, i, j: (b, 0, jnp.minimum(i, j), 0)

    out = pl.pallas_call(
        _make_attention_kernel(H, hs, tq, tk),
        out_shape=jax.ShapeDtypeStruct((B, T, E), x.dtype),
        grid=(B, nq, nk),
        in_specs=[
            pl.BlockSpec((1, H, tq, hs), lambda b, i, j: (b, 0, i, 0)),  # Q
            pl.BlockSpec((1, H, tk, hs), kv_index),                      # K
            pl.BlockSpec((1, H, tk, hs), kv_index),                      # V
            pl.BlockSpec((H, hs, E), lambda b, i, j: (0, 0, 0)),         # w_out
            pl.BlockSpec((1, E), lambda b, i, j: (0, 0)),                # bias
        ],
        out_specs=pl.BlockSpec((1, tq, E), lambda b, i, j: (b, i, 0)),
        scratch_shapes=[
            pltpu.VMEM((H, tq, 1), jnp.float32),    # m  (running max per head)
            pltpu.VMEM((H, tq, 1), jnp.float32),    # l  (running denom per head)
            pltpu.VMEM((H, tq, hs), jnp.float32),   # acc (unnormalized output)
        ],
        compiler_params=pltpu.CompilerParams(
            dimension_semantics=("parallel", "parallel", "arbitrary"),
            vmem_limit_bytes=64 * 1024 * 1024),
    )(q, k, v, w3, b2)
    return out


# ---------------------------------------------------------------------------
# Pure-JAX reference (mirrors the PyTorch forward exactly, eval mode)
# ---------------------------------------------------------------------------
def _reference(x, wq, wk, wv, w_out, b_out):
    B, T, E = x.shape
    H, _, hs = wq.shape
    heads = []
    mask = jnp.tril(jnp.ones((T, T)))
    for h in range(H):
        q = x @ wq[h]
        k = x @ wk[h]
        v = x @ wv[h]
        s = q @ jnp.swapaxes(k, -2, -1) / (hs ** 0.5)
        s = jnp.where(mask == 0, -jnp.inf, s)
        s = jax.nn.softmax(s, axis=-1)
        heads.append(s @ v)                     # (B, T, hs)
    stacked = jnp.stack(heads, axis=3)          # (B, T, hs, H)
    cat = stacked.reshape(B, T, H * hs)
    return cat @ w_out + b_out


if __name__ == "__main__":
    # Small deterministic config (context_len == T == 8)
    B, T, E, H, hs = 2, 8, 32, 4, 8
    key = jax.random.PRNGKey(0)
    k1, k2, k3, k4, k5, k6 = jax.random.split(key, 6)

    x = jax.random.normal(k1, (B, T, E), dtype=jnp.float32)
    wq = 0.1 * jax.random.normal(k2, (H, E, hs), dtype=jnp.float32)
    wk = 0.1 * jax.random.normal(k3, (H, E, hs), dtype=jnp.float32)
    wv = 0.1 * jax.random.normal(k4, (H, E, hs), dtype=jnp.float32)
    w_out = 0.1 * jax.random.normal(k5, (H * hs, E), dtype=jnp.float32)
    b_out = 0.1 * jax.random.normal(k6, (E,), dtype=jnp.float32)

    mha = jax.jit(multi_head_attention)
    out = mha(x, wq, wk, wv, w_out, b_out)
    out = jax.block_until_ready(out)

    ref = _reference(x, wq, wk, wv, w_out, b_out)
    assert out.shape == (B, T, E)
    assert jnp.allclose(out, ref, atol=2e-3, rtol=2e-3), "mismatch vs reference"

    print("KERNEL_OK")
</pallas_src>

<mosaic_0001>
module attributes {stable_mosaic.version = 11 : i64} {
  func.func @kernel(%arg0: i32, %arg1: i32, %arg2: i32, %arg3: memref<1x8x32xf32, #tpu.memory_space<vmem>>, %arg4: memref<1x32x24xf32, #tpu.memory_space<vmem>>, %arg5: memref<1x1x8x8xf32, #tpu.memory_space<vmem>>, %arg6: memref<1x1x8x8xf32, #tpu.memory_space<vmem>>, %arg7: memref<1x1x8x8xf32, #tpu.memory_space<vmem>>) attributes {dimension_semantics = [#tpu.dimension_semantics<parallel>, #tpu.dimension_semantics<parallel>, #tpu.dimension_semantics<arbitrary>], iteration_bounds = array<i64: 2, 1, 4>, scalar_prefetch = 0 : i64, scratch_operands = 0 : i64, tpu.core_type = #tpu.core_type<tc>, window_params = [{transform_indices = @transform_0, window_bounds = array<i64: 1, 8, 32>}, {transform_indices = @transform_1, window_bounds = array<i64: 1, 32, 24>}, {transform_indices = @transform_2, window_bounds = array<i64: 1, 1, 8, 8>}, {transform_indices = @transform_3, window_bounds = array<i64: 1, 1, 8, 8>}, {transform_indices = @transform_4, window_bounds = array<i64: 1, 1, 8, 8>}]} {
    %c0 = arith.constant 0 : index
    %c0_0 = arith.constant 0 : index
    %c0_1 = arith.constant 0 : index
    %0 = vector.load %arg3[%c0, %c0_0, %c0_1] : memref<1x8x32xf32, #tpu.memory_space<vmem>>, vector<1x8x32xf32>
    %1 = vector.shape_cast %0 : vector<1x8x32xf32> to vector<8x32xf32>
    %c0_2 = arith.constant 0 : index
    %c0_3 = arith.constant 0 : index
    %c0_4 = arith.constant 0 : index
    %2 = vector.load %arg4[%c0_2, %c0_3, %c0_4] : memref<1x32x24xf32, #tpu.memory_space<vmem>>, vector<1x32x24xf32>
    %3 = vector.shape_cast %2 : vector<1x32x24xf32> to vector<32x24xf32>
    %cst = arith.constant dense<0.000000e+00> : vector<8x24xf32>
    %4 = tpu.matmul %1, %3, %cst {dimension_numbers = #tpu.dot_dimension_numbers<[1], [0], [0], [1], [0, 0, 1, 1], [], []>} : vector<8x32xf32>, vector<32x24xf32>, vector<8x24xf32> -> vector<8x24xf32>
    %5 = vector.extract_strided_slice %4 {offsets = [0, 0], sizes = [8, 8], strides = [1, 1]} : vector<8x24xf32> to vector<8x8xf32>
    %c0_5 = arith.constant 0 : index
    %c0_6 = arith.constant 0 : index
    %c0_7 = arith.constant 0 : index
    %c0_8 = arith.constant 0 : index
    %6 = vector.load %arg5[%c0_5, %c0_6, %c0_7, %c0_8] : memref<1x1x8x8xf32, #tpu.memory_space<vmem>>, vector<1x1x8x8xf32>
    %7 = vector.shape_cast %6 : vector<1x1x8x8xf32> to vector<8x8xf32>
    %8 = vector.shape_cast %5 : vector<8x8xf32> to vector<1x1x8x8xf32>
    tpu.vector_store %arg5[%c0_5, %c0_6, %c0_7, %c0_8], %8 {strides = array<i32>} : memref<1x1x8x8xf32, #tpu.memory_space<vmem>>, vector<1x1x8x8xf32>,
    %9 = vector.extract_strided_slice %4 {offsets = [0, 8], sizes = [8, 8], strides = [1, 1]} : vector<8x24xf32> to vector<8x8xf32>
    %c0_9 = arith.constant 0 : index
    %c0_10 = arith.constant 0 : index
    %c0_11 = arith.constant 0 : index
    %c0_12 = arith.constant 0 : index
    %10 = vector.load %arg6[%c0_9, %c0_10, %c0_11, %c0_12] : memref<1x1x8x8xf32, #tpu.memory_space<vmem>>, vector<1x1x8x8xf32>
    %11 = vector.shape_cast %10 : vector<1x1x8x8xf32> to vector<8x8xf32>
    %12 = vector.shape_cast %9 : vector<8x8xf32> to vector<1x1x8x8xf32>
    tpu.vector_store %arg6[%c0_9, %c0_10, %c0_11, %c0_12], %12 {strides = array<i32>} : memref<1x1x8x8xf32, #tpu.memory_space<vmem>>, vector<1x1x8x8xf32>,
    %13 = vector.extract_strided_slice %4 {offsets = [0, 16], sizes = [8, 8], strides = [1, 1]} : vector<8x24xf32> to vector<8x8xf32>
    %c0_13 = arith.constant 0 : index
    %c0_14 = arith.constant 0 : index
    %c0_15 = arith.constant 0 : index
    %c0_16 = arith.constant 0 : index
    %14 = vector.load %arg7[%c0_13, %c0_14, %c0_15, %c0_16] : memref<1x1x8x8xf32, #tpu.memory_space<vmem>>, vector<1x1x8x8xf32>
    %15 = vector.shape_cast %14 : vector<1x1x8x8xf32> to vector<8x8xf32>
    %16 = vector.shape_cast %13 : vector<8x8xf32> to vector<1x1x8x8xf32>
    tpu.vector_store %arg7[%c0_13, %c0_14, %c0_15, %c0_16], %16 {strides = array<i32>} : memref<1x1x8x8xf32, #tpu.memory_space<vmem>>, vector<1x1x8x8xf32>,
    return
  }
  func.func @transform_0(%arg0: i32, %arg1: i32, %arg2: i32) -> (i32, i32, i32) {
    %c0_i32 = arith.constant 0 : i32
    %c0_i32_0 = arith.constant 0 : i32
    return %arg0, %arg1, %c0_i32 : i32, i32, i32
  }
  func.func @transform_1(%arg0: i32, %arg1: i32, %arg2: i32) -> (i32, i32, i32) {
    %c0_i32 = arith.constant 0 : i32
    %c0_i32_0 = arith.constant 0 : i32
    %c0_i32_1 = arith.constant 0 : i32
    return %arg2, %c0_i32, %c0_i32_0 : i32, i32, i32
  }
  func.func @transform_2(%arg0: i32, %arg1: i32, %arg2: i32) -> (i32, i32, i32, i32) {
    %c0_i32 = arith.constant 0 : i32
    %c0_i32_0 = arith.constant 0 : i32
    return %arg0, %arg2, %arg1, %c0_i32 : i32, i32, i32, i32
  }
  func.func @transform_3(%arg0: i32, %arg1: i32, %arg2: i32) -> (i32, i32, i32, i32) {
    %c0_i32 = arith.constant 0 : i32
    %c0_i32_0 = arith.constant 0 : i32
    return %arg0, %arg2, %arg1, %c0_i32 : i32, i32, i32, i32
  }
  func.func @transform_4(%arg0: i32, %arg1: i32, %arg2: i32) -> (i32, i32, i32, i32) {
    %c0_i32 = arith.constant 0 : i32
    %c0_i32_0 = arith.constant 0 : i32
    return %arg0, %arg2, %arg1, %c0_i32 : i32, i32, i32, i32
  }
}

module attributes {stable_mosaic.version = 11 : i64} {
  func.func @kernel(%arg0: i32, %arg1: i32, %arg2: i32, %arg3: memref<1x4x8x8xf32, #tpu.memory_space<vmem>>, %arg4: memref<1x4x8x8xf32, #tpu.memory_space<vmem>>, %arg5: memref<1x4x8x8xf32, #tpu.memory_space<vmem>>, %arg6: memref<4x8x32xf32, #tpu.memory_space<vmem>>, %arg7: memref<1x32xf32, #tpu.memory_space<vmem>>, %arg8: memref<1x8x32xf32, #tpu.memory_space<vmem>>, %arg9: memref<4x8x1xf32, #tpu.memory_space<vmem>>, %arg10: memref<4x8x1xf32, #tpu.memory_space<vmem>>, %arg11: memref<4x8x8xf32, #tpu.memory_space<vmem>>) attributes {dimension_semantics = [#tpu.dimension_semantics<parallel>, #tpu.dimension_semantics<parallel>, #tpu.dimension_semantics<arbitrary>], iteration_bounds = array<i64: 2, 1, 1>, scalar_prefetch = 0 : i64, scratch_operands = 3 : i64, tpu.core_type = #tpu.core_type<tc>, window_params = [{transform_indices = @transform_0, window_bounds = array<i64: 1, 4, 8, 8>}, {transform_indices = @transform_1, window_bounds = array<i64: 1, 4, 8, 8>}, {transform_indices = @transform_2, window_bounds = array<i64: 1, 4, 8, 8>}, {pipeline_mode = #tpu.pipeline_mode<synchronous>, transform_indices = @transform_3, window_bounds = array<i64: 4, 8, 32>}, {pipeline_mode = #tpu.pipeline_mode<synchronous>, transform_indices = @transform_4, window_bounds = array<i64: 1, 32>}, {transform_indices = @transform_5, window_bounds = array<i64: 1, 8, 32>}]} {
    %c0_i32 = arith.constant 0 : i32
    %0 = arith.cmpi eq, %arg2, %c0_i32 : i32
    %1 = arith.extui %0 : i1 to i32
    %c0_i32_0 = arith.constant 0 : i32
    %2 = arith.cmpi ne, %1, %c0_i32_0 : i32
    scf.if %2 {
      %cst = arith.constant -1.000000e+30 : f32
      %9 = vector.broadcast %cst : f32 to vector<4x8x1xf32>
      %c0 = arith.constant 0 : index
      %c0_3 = arith.constant 0 : index
      %c0_4 = arith.constant 0 : index
      %10 = vector.load %arg9[%c0, %c0_3, %c0_4] : memref<4x8x1xf32, #tpu.memory_space<vmem>>, vector<4x8x1xf32>
      tpu.vector_store %arg9[%c0, %c0_3, %c0_4], %9 {strides = array<i32>} : memref<4x8x1xf32, #tpu.memory_space<vmem>>, vector<4x8x1xf32>,
      %cst_5 = arith.constant 0.000000e+00 : f32
      %11 = vector.broadcast %cst_5 : f32 to vector<4x8x1xf32>
      %c0_6 = arith.constant 0 : index
      %c0_7 = arith.constant 0 : index
      %c0_8 = arith.constant 0 : index
      %12 = vector.load %arg10[%c0_6, %c0_7, %c0_8] : memref<4x8x1xf32, #tpu.memory_space<vmem>>, vector<4x8x1xf32>
      tpu.vector_store %arg10[%c0_6, %c0_7, %c0_8], %11 {strides = array<i32>} : memref<4x8x1xf32, #tpu.memory_space<vmem>>, vector<4x8x1xf32>,
      %cst_9 = arith.constant 0.000000e+00 : f32
      %13 = vector.broadcast %cst_9 : f32 to vector<4x8x8xf32>
      %c0_10 = arith.constant 0 : index
      %c0_11 = arith.constant 0 : index
      %c0_12 = arith.constant 0 : index
      %14 = vector.load %arg11[%c0_10, %c0_11, %c0_12] : memref<4x8x8xf32, #tpu.memory_space<vmem>>, vector<4x8x8xf32>
      tpu.vector_store %arg11[%c0_10, %c0_11, %c0_12], %13 {strides = array<i32>} : memref<4x8x8xf32, #tpu.memory_space<vmem>>, vector<4x8x8xf32>,
    } else {
    }
    %3 = arith.cmpi slt, %arg2, %arg1 : i32
    %4 = arith.extui %3 : i1 to i32
    %c0_i32_1 = arith.constant 0 : i32
    %5 = arith.cmpi ne, %4, %c0_i32_1 : i32
    scf.if %5 {
      %c0 = arith.constant 0 : index
      %c0_3 = arith.constant 0 : index
      %c0_4 = arith.constant 0 : index
      %c0_5 = arith.constant 0 : index
      %9 = vector.load %arg3[%c0, %c0_3, %c0_4, %c0_5] : memref<1x4x8x8xf32, #tpu.memory_space<vmem>>, vector<1x4x8x8xf32>
      %10 = vector.shape_cast %9 : vector<1x4x8x8xf32> to vector<4x8x8xf32>
      %c0_6 = arith.constant 0 : index
      %c0_7 = arith.constant 0 : index
      %c0_8 = arith.constant 0 : index
      %c0_9 = arith.constant 0 : index
      %11 = vector.load %arg4[%c0_6, %c0_7, %c0_8, %c0_9] : memref<1x4x8x8xf32, #tpu.memory_space<vmem>>, vector<1x4x8x8xf32>
      %12 = vector.shape_cast %11 : vector<1x4x8x8xf32> to vector<4x8x8xf32>
      "tpu.trace_start"() <{level = 10 : i32, message = "hqd,hkd->hqk"}> : () -> ()
      %cst = arith.constant dense<0.000000e+00> : vector<4x8x8xf32>
      %13 = tpu.matmul %10, %12, %cst {dimension_numbers = #tpu.dot_dimension_numbers<[2], [2], [1], [1], [0, 0, 0, 1, 1, 1], [0], [0]>} : vector<4x8x8xf32>, vector<4x8x8xf32>, vector<4x8x8xf32> -> vector<4x8x8xf32>
      "tpu.trace_stop"() : () -> ()
      %c0_10 = arith.constant 0 : index
      %c0_11 = arith.constant 0 : index
      %c0_12 = arith.constant 0 : index
      %14 = vector.load %arg9[%c0_10, %c0_11, %c0_12] : memref<4x8x1xf32, #tpu.memory_space<vmem>>, vector<4x8x1xf32>
      %cst_13 = arith.constant dense<0xFF800000> : vector<4x8xf32>
      %15 = vector.multi_reduction <maximumf>, %13, %cst_13 [2] : vector<4x8x8xf32> to vector<4x8xf32>
      %16 = vector.shape_cast %15 : vector<4x8xf32> to vector<4x8x1xf32>
      %17 = arith.maximumf %14, %16 : vector<4x8x1xf32>
      %18 = arith.subf %14, %17 : vector<4x8x1xf32>
      %19 = math.exp %18 : vector<4x8x1xf32>
      %20 = vector.broadcast %17 : vector<4x8x1xf32> to vector<4x8x8xf32>
      %21 = arith.subf %13, %20 : vector<4x8x8xf32>
      %22 = math.exp %21 : vector<4x8x8xf32>
      %c0_14 = arith.constant 0 : index
      %c0_15 = arith.constant 0 : index
      %c0_16 = arith.constant 0 : index
      %23 = vector.load %arg10[%c0_14, %c0_15, %c0_16] : memref<4x8x1xf32, #tpu.memory_space<vmem>>, vector<4x8x1xf32>
      %24 = arith.mulf %19, %23 : vector<4x8x1xf32>
      %cst_17 = arith.constant dense<0.000000e+00> : vector<4x8xf32>
      %25 = vector.multi_reduction <add>, %22, %cst_17 [2] : vector<4x8x8xf32> to vector<4x8xf32>
      %26 = vector.shape_cast %25 : vector<4x8xf32> to vector<4x8x1xf32>
      %27 = arith.addf %24, %26 : vector<4x8x1xf32>
      %c0_18 = arith.constant 0 : index
      %c0_19 = arith.constant 0 : index
      %c0_20 = arith.constant 0 : index
      %28 = vector.load %arg10[%c0_18, %c0_19, %c0_20] : memref<4x8x1xf32, #tpu.memory_space<vmem>>, vector<4x8x1xf32>
      tpu.vector_store %arg10[%c0_18, %c0_19, %c0_20], %27 {strides = array<i32>} : memref<4x8x1xf32, #tpu.memory_space<vmem>>, vector<4x8x1xf32>,
      %c0_21 = arith.constant 0 : index
      %c0_22 = arith.constant 0 : index
      %c0_23 = arith.constant 0 : index
      %29 = vector.load %arg11[%c0_21, %c0_22, %c0_23] : memref<4x8x8xf32, #tpu.memory_space<vmem>>, vector<4x8x8xf32>
      %30 = vector.broadcast %19 : vector<4x8x1xf32> to vector<4x8x8xf32>
      %31 = arith.mulf %30, %29 : vector<4x8x8xf32>
      %c0_24 = arith.constant 0 : index
      %c0_25 = arith.constant 0 : index
      %c0_26 = arith.constant 0 : index
      %c0_27 = arith.constant 0 : index
      %32 = vector.load %arg5[%c0_24, %c0_25, %c0_26, %c0_27] : memref<1x4x8x8xf32, #tpu.memory_space<vmem>>, vector<1x4x8x8xf32>
      %33 = vector.shape_cast %32 : vector<1x4x8x8xf32> to vector<4x8x8xf32>
      "tpu.trace_start"() <{level = 10 : i32, message = "hqk,hkd->hqd"}> : () -> ()
      %cst_28 = arith.constant dense<0.000000e+00> : vector<4x8x8xf32>
      %34 = tpu.matmul %22, %33, %cst_28 {dimension_numbers = #tpu.dot_dimension_numbers<[2], [1], [1], [2], [0, 0, 0, 1, 1, 2], [0], [0]>} : vector<4x8x8xf32>, vector<4x8x8xf32>, vector<4x8x8xf32> -> vector<4x8x8xf32>
      "tpu.trace_stop"() : () -> ()
      %35 = arith.addf %31, %34 : vector<4x8x8xf32>
      %c0_29 = arith.constant 0 : index
      %c0_30 = arith.constant 0 : index
      %c0_31 = arith.constant 0 : index
      %36 = vector.load %arg11[%c0_29, %c0_30, %c0_31] : memref<4x8x8xf32, #tpu.memory_space<vmem>>, vector<4x8x8xf32>
      tpu.vector_store %arg11[%c0_29, %c0_30, %c0_31], %35 {strides = array<i32>} : memref<4x8x8xf32, #tpu.memory_space<vmem>>, vector<4x8x8xf32>,
      %c0_32 = arith.constant 0 : index
      %c0_33 = arith.constant 0 : index
      %c0_34 = arith.constant 0 : index
      %37 = vector.load %arg9[%c0_32, %c0_33, %c0_34] : memref<4x8x1xf32, #tpu.memory_space<vmem>>, vector<4x8x1xf32>
      tpu.vector_store %arg9[%c0_32, %c0_33, %c0_34], %17 {strides = array<i32>} : memref<4x8x1xf32, #tpu.memory_space<vmem>>, vector<4x8x1xf32>,
    } else {
    }
    %6 = arith.cmpi eq, %arg2, %arg1 : i32
    %7 = arith.extui %6 : i1 to i32
    %c0_i32_2 = arith.constant 0 : i32
    %8 = arith.cmpi ne, %7, %c0_i32_2 : i32
    scf.if %8 {
      %c0 = arith.constant 0 : index
      %c0_3 = arith.constant 0 : index
      %c0_4 = arith.constant 0 : index
      %c0_5 = arith.constant 0 : index
      %9 = vector.load %arg3[%c0, %c0_3, %c0_4, %c0_5] : memref<1x4x8x8xf32, #tpu.memory_space<vmem>>, vector<1x4x8x8xf32>
      %10 = vector.shape_cast %9 : vector<1x4x8x8xf32> to vector<4x8x8xf32>
      %c0_6 = arith.constant 0 : index
      %c0_7 = arith.constant 0 : index
      %c0_8 = arith.constant 0 : index
      %c0_9 = arith.constant 0 : index
      %11 = vector.load %arg4[%c0_6, %c0_7, %c0_8, %c0_9] : memref<1x4x8x8xf32, #tpu.memory_space<vmem>>, vector<1x4x8x8xf32>
      %12 = vector.shape_cast %11 : vector<1x4x8x8xf32> to vector<4x8x8xf32>
      "tpu.trace_start"() <{level = 10 : i32, message = "hqd,hkd->hqk"}> : () -> ()
      %cst = arith.constant dense<0.000000e+00> : vector<4x8x8xf32>
      %13 = tpu.matmul %10, %12, %cst {dimension_numbers = #tpu.dot_dimension_numbers<[2], [2], [1], [1], [0, 0, 0, 1, 1, 1], [0], [0]>} : vector<4x8x8xf32>, vector<4x8x8xf32>, vector<4x8x8xf32> -> vector<4x8x8xf32>
      "tpu.trace_stop"() : () -> ()
      %14 = tpu.iota {dimensions = array<i32: 0>} : vector<8x8xi32>
      %15 = tpu.iota {dimensions = array<i32: 1>} : vector<8x8xi32>
      %16 = arith.cmpi sle, %15, %14 : vector<8x8xi32>
      %17 = vector.shape_cast %16 : vector<8x8xi1> to vector<1x8x8xi1>
      %cst_10 = arith.constant -1.000000e+30 : f32
      %18 = vector.shape_cast %17 : vector<1x8x8xi1> to vector<1x8x8xi1>
      %19 = vector.broadcast %18 : vector<1x8x8xi1> to vector<4x8x8xi1>
      %20 = vector.broadcast %cst_10 : f32 to vector<4x8x8xf32>
      %21 = arith.select %19, %13, %20 : vector<4x8x8xi1>, vector<4x8x8xf32>
      %c0_11 = arith.constant 0 : index
      %c0_12 = arith.constant 0 : index
      %c0_13 = arith.constant 0 : index
      %22 = vector.load %arg9[%c0_11, %c0_12, %c0_13] : memref<4x8x1xf32, #tpu.memory_space<vmem>>, vector<4x8x1xf32>
      %cst_14 = arith.constant dense<0xFF800000> : vector<4x8xf32>
      %23 = vector.multi_reduction <maximumf>, %21, %cst_14 [2] : vector<4x8x8xf32> to vector<4x8xf32>
      %24 = vector.shape_cast %23 : vector<4x8xf32> to vector<4x8x1xf32>
      %25 = arith.maximumf %22, %24 : vector<4x8x1xf32>
      %26 = arith.subf %22, %25 : vector<4x8x1xf32>
      %27 = math.exp %26 : vector<4x8x1xf32>
      %28 = vector.broadcast %25 : vector<4x8x1xf32> to vector<4x8x8xf32>
      %29 = arith.subf %21, %28 : vector<4x8x8xf32>
      %30 = math.exp %29 : vector<4x8x8xf32>
      %c0_15 = arith.constant 0 : index
      %c0_16 = arith.constant 0 : index
      %c0_17 = arith.constant 0 : index
      %31 = vector.load %arg10[%c0_15, %c0_16, %c0_17] : memref<4x8x1xf32, #tpu.memory_space<vmem>>, vector<4x8x1xf32>
      %32 = arith.mulf %27, %31 : vector<4x8x1xf32>
      %cst_18 = arith.constant dense<0.000000e+00> : vector<4x8xf32>
      %33 = vector.multi_reduction <add>, %30, %cst_18 [2] : vector<4x8x8xf32> to vector<4x8xf32>
      %34 = vector.shape_cast %33 : vector<4x8xf32> to vector<4x8x1xf32>
      %35 = arith.addf %32, %34 : vector<4x8x1xf32>
      %c0_19 = arith.constant 0 : index
      %c0_20 = arith.constant 0 : index
      %c0_21 = arith.constant 0 : index
      %36 = vector.load %arg10[%c0_19, %c0_20, %c0_21] : memref<4x8x1xf32, #tpu.memory_space<vmem>>, vector<4x8x1xf32>
      tpu.vector_store %arg10[%c0_19, %c0_20, %c0_21], %35 {strides = array<i32>} : memref<4x8x1xf32, #tpu.memory_space<vmem>>, vector<4x8x1xf32>,
      %c0_22 = arith.constant 0 : index
      %c0_23 = arith.constant 0 : index
      %c0_24 = arith.constant 0 : index
      %37 = vector.load %arg11[%c0_22, %c0_23, %c0_24] : memref<4x8x8xf32, #tpu.memory_space<vmem>>, vector<4x8x8xf32>
      %38 = vector.broadcast %27 : vector<4x8x1xf32> to vector<4x8x8xf32>
      %39 = arith.mulf %38, %37 : vector<4x8x8xf32>
      %c0_25 = arith.constant 0 : index
      %c0_26 = arith.constant 0 : index
      %c0_27 = arith.constant 0 : index
      %c0_28 = arith.constant 0 : index
      %40 = vector.load %arg5[%c0_25, %c0_26, %c0_27, %c0_28] : memref<1x4x8x8xf32, #tpu.memory_space<vmem>>, vector<1x4x8x8xf32>
      %41 = vector.shape_cast %40 : vector<1x4x8x8xf32> to vector<4x8x8xf32>
      "tpu.trace_start"() <{level = 10 : i32, message = "hqk,hkd->hqd"}> : () -> ()
      %cst_29 = arith.constant dense<0.000000e+00> : vector<4x8x8xf32>
      %42 = tpu.matmul %30, %41, %cst_29 {dimension_numbers = #tpu.dot_dimension_numbers<[2], [1], [1], [2], [0, 0, 0, 1, 1, 2], [0], [0]>} : vector<4x8x8xf32>, vector<4x8x8xf32>, vector<4x8x8xf32> -> vector<4x8x8xf32>
      "tpu.trace_stop"() : () -> ()
      %43 = arith.addf %39, %42 : vector<4x8x8xf32>
      %c0_30 = arith.constant 0 : index
      %c0_31 = arith.constant 0 : index
      %c0_32 = arith.constant 0 : index
      %44 = vector.load %arg11[%c0_30, %c0_31, %c0_32] : memref<4x8x8xf32, #tpu.memory_space<vmem>>, vector<4x8x8xf32>
      tpu.vector_store %arg11[%c0_30, %c0_31, %c0_32], %43 {strides = array<i32>} : memref<4x8x8xf32, #tpu.memory_space<vmem>>, vector<4x8x8xf32>,
      %c0_33 = arith.constant 0 : index
      %c0_34 = arith.constant 0 : index
      %c0_35 = arith.constant 0 : index
      %45 = vector.load %arg9[%c0_33, %c0_34, %c0_35] : memref<4x8x1xf32, #tpu.memory_space<vmem>>, vector<4x8x1xf32>
      tpu.vector_store %arg9[%c0_33, %c0_34, %c0_35], %25 {strides = array<i32>} : memref<4x8x1xf32, #tpu.memory_space<vmem>>, vector<4x8x1xf32>,
      %c0_36 = arith.constant 0 : index
      %c0_37 = arith.constant 0 : index
      %c0_38 = arith.constant 0 : index
      %46 = vector.load %arg11[%c0_36, %c0_37, %c0_38] : memref<4x8x8xf32, #tpu.memory_space<vmem>>, vector<4x8x8xf32>
      %c0_39 = arith.constant 0 : index
      %c0_40 = arith.constant 0 : index
      %c0_41 = arith.constant 0 : index
      %47 = vector.load %arg10[%c0_39, %c0_40, %c0_41] : memref<4x8x1xf32, #tpu.memory_space<vmem>>, vector<4x8x1xf32>
      %48 = vector.broadcast %47 : vector<4x8x1xf32> to vector<4x8x8xf32>
      %49 = arith.divf %46, %48 : vector<4x8x8xf32>
      %c0_42 = arith.constant 0 : index
      %c0_43 = arith.constant 0 : index
      %c0_44 = arith.constant 0 : index
      %50 = vector.load %arg6[%c0_42, %c0_43, %c0_44] : memref<4x8x32xf32, #tpu.memory_space<vmem>>, vector<4x8x32xf32>
      "tpu.trace_start"() <{level = 10 : i32, message = "hqd,hde->hqe"}> : () -> ()
      %cst_45 = arith.constant dense<0.000000e+00> : vector<4x8x32xf32>
      %51 = tpu.matmul %49, %50, %cst_45 {dimension_numbers = #tpu.dot_dimension_numbers<[2], [1], [1], [2], [0, 0, 0, 1, 1, 2], [0], [0]>} : vector<4x8x8xf32>, vector<4x8x32xf32>, vector<4x8x32xf32> -> vector<4x8x32xf32>
      "tpu.trace_stop"() : () -> ()
      %cst_46 = arith.constant dense<0.000000e+00> : vector<8x32xf32>
      %52 = vector.multi_reduction <add>, %51, %cst_46 [0] : vector<4x8x32xf32> to vector<8x32xf32>
      %c0_47 = arith.constant 0 : index
      %c0_48 = arith.constant 0 : index
      %53 = vector.load %arg7[%c0_47, %c0_48] : memref<1x32xf32, #tpu.memory_space<vmem>>, vector<1x32xf32>
      %54 = vector.broadcast %53 : vector<1x32xf32> to vector<8x32xf32>
      %55 = arith.addf %52, %54 : vector<8x32xf32>
      %c0_49 = arith.constant 0 : index
      %c0_50 = arith.constant 0 : index
      %c0_51 = arith.constant 0 : index
      %56 = vector.load %arg8[%c0_49, %c0_50, %c0_51] : memref<1x8x32xf32, #tpu.memory_space<vmem>>, vector<1x8x32xf32>
      %57 = vector.shape_cast %56 : vector<1x8x32xf32> to vector<8x32xf32>
      %58 = vector.shape_cast %55 : vector<8x32xf32> to vector<1x8x32xf32>
      tpu.vector_store %arg8[%c0_49, %c0_50, %c0_51], %58 {strides = array<i32>} : memref<1x8x32xf32, #tpu.memory_space<vmem>>, vector<1x8x32xf32>,
    } else {
    }
    return
  }
  func.func @transform_0(%arg0: i32, %arg1: i32, %arg2: i32) -> (i32, i32, i32, i32) {
    %c0_i32 = arith.constant 0 : i32
    %c0_i32_0 = arith.constant 0 : i32
    %c0_i32_1 = arith.constant 0 : i32
    return %arg0, %c0_i32, %arg1, %c0_i32_0 : i32, i32, i32, i32
  }
  func.func @transform_1(%arg0: i32, %arg1: i32, %arg2: i32) -> (i32, i32, i32, i32) {
    %0 = arith.minsi %arg1, %arg2 : i32
    %c0_i32 = arith.constant 0 : i32
    %c0_i32_0 = arith.constant 0 : i32
    %c0_i32_1 = arith.constant 0 : i32
    return %arg0, %c0_i32, %0, %c0_i32_0 : i32, i32, i32, i32
  }
  func.func @transform_2(%arg0: i32, %arg1: i32, %arg2: i32) -> (i32, i32, i32, i32) {
    %0 = arith.minsi %arg1, %arg2 : i32
    %c0_i32 = arith.constant 0 : i32
    %c0_i32_0 = arith.constant 0 : i32
    %c0_i32_1 = arith.constant 0 : i32
    return %arg0, %c0_i32, %0, %c0_i32_0 : i32, i32, i32, i32
  }
  func.func @transform_3(%arg0: i32, %arg1: i32, %arg2: i32) -> (i32, i32, i32) {
    %c0_i32 = arith.constant 0 : i32
    %c0_i32_0 = arith.constant 0 : i32
    %c0_i32_1 = arith.constant 0 : i32
    %c0_i32_2 = arith.constant 0 : i32
    return %c0_i32, %c0_i32_0, %c0_i32_1 : i32, i32, i32
  }
  func.func @transform_4(%arg0: i32, %arg1: i32, %arg2: i32) -> (i32, i32) {
    %c0_i32 = arith.constant 0 : i32
    %c0_i32_0 = arith.constant 0 : i32
    %c0_i32_1 = arith.constant 0 : i32
    return %c0_i32, %c0_i32_0 : i32, i32
  }
  func.func @transform_5(%arg0: i32, %arg1: i32, %arg2: i32) -> (i32, i32, i32) {
    %c0_i32 = arith.constant 0 : i32
    %c0_i32_0 = arith.constant 0 : i32
    return %arg0, %arg1, %c0_i32 : i32, i32, i32
  }
}

</mosaic_0001>

<bundles_post_ra>
// kernel: multi_head_attention.2
= control target key start
LH: loop header
LB: loop body
LE: loop exit
PB: predicated region body
PF: predicated region fallthrough
CT: control target
= control target key end

     0   :  { %s777_s15 = smov 0   ;;  %s779_s16 = smov 0   ;;  %s837_s0 = inlined_call_operand.vmem [shape: f32[2,8,32], index: 0, kind: input, shape index: {}]   ;;  %s838_s1 = inlined_call_operand.vmem [shape: f32[4,32,24], index: 1, kind: input, shape index: {}]   ;;  %s839_s2 = inlined_call_operand.vmem [shape: f32[2,4,8,8], index: 2, kind: output, shape index: {0}]   ;;  %s840_s3 = inlined_call_operand.vmem [shape: f32[2,4,8,8], index: 3, kind: output, shape index: {1}]   ;;  %s841_s4 = inlined_call_operand.vmem [shape: f32[2,4,8,8], index: 4, kind: output, shape index: {2}]  }
   0x1   :  { %s781_s17 = smov 0   ;;  %s783_s18 = smov 0  }
   0x2   :  { %s785_s19 = smov 0  }
   0x3 LB: > { %s27_s20 = sadd.s32 1, %s738_s17  ;;  %s34_s21 = sadd.s32 1, %s742_s18  ;;  %s746_s19 = sphi %s785_s19, %s15_s19   ;;  %s742_s18 = sphi %s783_s18, %s845_s18   ;;  %s738_s17 = sphi %s781_s17, %s844_s17   ;;  %s734_s16 = sphi %s779_s16, %s843_s16   ;;  %s730_s15 = sphi %s777_s15, %s842_s15  }
   0x4   : > { %p28_p0 = scmp.ge.s32.totalorder %s27_s20, 4  ;;  %p634_p1 = scmp.ge.s32.totalorder %s746_s19, 1 }
   0x5   : > { %p212_p2 = scmp.lt.s32.totalorder %s746_s19, 9 }
   0x6   : > { %s847_s20 = smov (%p28_p0, %s27_s20), 0  ;;  %s849_s21 = smov (!%p28_p0, %s34_s21), %s742_s18 }
   0x7   : > { %p213_p3 = pnand %p634_p1, %p212_p2  ;;  %p36_p4 = scmp.ge.s32.totalorder %s849_s21, 2 }
   0x8   : > { %p280_p5 = scmp.lt.s32.totalorder (!%p213_p3), %s730_s15, 3  ;;  %p273_p6 = scmp.lt.s32.totalorder (!%p213_p3), %s734_s16, 1 }
   0x9   : > { %s851_s21 = smov (%p36_p4, %s849_s21), 0  ;;  %216 = sbr.rel (%p213_p3) target bundleno = 338 (0x152), region = 28 }
   0xa   : > { %s750_s10 = smov (!%p213_p3), 120   ;;  %s751_s11 = smov (!%p213_p3), 112  }
   0xe   : > { %v748_v0 = vmov 0.0   ;;  %vm749_vm0 = vmmov 0   ;;  %s853_s15 = smov (!%p280_p5, %s730_s15), 3  ;;  %s855_s16 = smov (!%p273_p6, %s734_s16), 1  ;;  %vm323_vm1 = vcmask 261120   ;;  %vm397_vm2 = vcmask 64512  }
   0xf   : > { %653 = vmatprep.subr.mxu0 %v748_v0  ;;  %661 = vmatprep.mubr.msk.f32.mxu0 %vm749_vm0, %v748_v0  ;;  %s647_s22 = sshll.u32 %s853_s15, 5  ;;  %s635_s26 = sshll.u32 %s855_s16, 3 }
  0x10   : > { %s284_s25 = scalar_lea.vmem %s838_s1, %s647_s22  ;;  %s638_s27 = sshll.u32 %s855_s16, 2 }
  0x11   : > { %v322_v1 = vld [vmem:[%s284_s25 + $0x18] sm:$0xff]  ;;  %v321_v2 = vld [vmem:[%s284_s25 + $0x10] sm:$0xff]  ;;  %s293_s28 = sadd.s32 %s638_s27, %s853_s15  ;;  %v320_v3 = vld [vmem:[%s284_s25 + $0x8] sm:$0xff]  ;;  %s279_s5 = scalar_lea.vmem %s837_s0, %s635_s26 }
  0x12   : > { %654 = vmatpush3.msra.mxu0 %v322_v1  ;;  %v319_v4 = vld [vmem:[%s284_s25] sm:$0xff]  ;;  %s639_s6 = sshll.u32 %s293_s28, 3 }
  0x13   : > { %655 = vmatprep.subr.mxu0 %v748_v0  ;;  %v318_v5 = vld [vmem:[%s279_s5] sm:$0xff]  ;;  %s295_s9 = scalar_lea.vmem %s839_s2, %s639_s6  ;;  %s306_s14 = scalar_lea.vmem %s840_s3, %s639_s6 }
  0x14   : > { %656 = vmatpush3.msra.mxu0 %v321_v2  ;;  %s317_s22 = scalar_lea.vmem %s841_s4, %s639_s6 }
  0x15   : > { %657 = vmatprep.subr.mxu0 %v748_v0 }
  0x16   : > { %658 = vmatpush3.msra.mxu0 %v320_v3 }
  0x17   : > { %659 = vmatprep.subr.mxu0 %v748_v0 }
  0x18   : > { %660 = vmatpush3.msra.mxu0 %v319_v4 }
  0x19   : > { %662 = vmatmul.mubr.msk.f32.vlgmr.msra.gmra.mxu0 %vm323_vm1, %v318_v5 }
  0xd9   : > { %v393_v6 = vpop.f32.mrf.mxu0 }
  0xda   : > { %398 = vst.msk [vmem:[%s295_s9] sm:$0xff] %vm397_vm2, %v393_v6  ;;  %400 = vrot.lane.b32.xlu0 %v393_v6, %s750_s10 }
  0xdb   : > { %v663_v7 = vpop.f32.mrf.mxu0 }
  0xde   : > { %404 = vrot.lane.b32.xlu0 %v393_v6, %s751_s11 }
 0x14c   : > { %v401_v8 = vpop.permute.xlu0 %400 }
 0x14d   : > { %403 = vst.msk [vmem:[%s306_s14] sm:$0xff] %vm397_vm2, %v401_v8 }
 0x150   : > { %v405_v9 = vpop.permute.xlu0 %404 }
 0x151   : > { %407 = vst.msk [vmem:[%s317_s22] sm:$0xff] %vm397_vm2, %v405_v9 }
 0x152 PF: > { %s15_s19 = sadd.s32 1, %s746_s19   ;;  %s842_s15 = smov %s738_s17 }
 0x153   : > { %p12_p7 = scmp.ge.s32.totalorder %s15_s19, 10   ;;  %s843_s16 = smov %s742_s18 }
 0x154   : > { %s844_s17 = smov %s847_s20  ;;  %s845_s18 = smov %s851_s21 }
 0x155   :  { %14 = sbr.rel (!%p12_p7) target bundleno = 3 (0x3), region = 85 }

// kernel: multi_head_attention.3
= control target key start
LH: loop header
LB: loop body
LE: loop exit
PB: predicated region body
PF: predicated region fallthrough
CT: control target
= control target key end

     0   :  { %10 = vsyncpa [#allocation6], 0  ;;  %s2927_s0 = inlined_call_operand.vmem [shape: f32[2,4,8,8], index: 0, kind: input, shape index: {}]   ;;  %s2928_s1 = inlined_call_operand.vmem [shape: f32[2,4,8,8], index: 1, kind: input, shape index: {}]   ;;  %s2929_s2 = inlined_call_operand.vmem [shape: f32[2,4,8,8], index: 2, kind: input, shape index: {}]   ;;  %s2930_s3 = inlined_call_operand.vmem [shape: f32[4,8,32], index: 3, kind: input, shape index: {}]   ;;  %s2931_s4 = inlined_call_operand.vmem [shape: f32[1,32], index: 4, kind: input, shape index: {}]   ;;  %s2932_s5 = inlined_call_operand.hbm [shape: f32[2,8,32], index: 5, kind: output, shape index: {}]  }
   0x1   :  { %12 = vsyncpa [#allocation6 + $0x1], 0  ;;  %s2673_s18 = smov 0   ;;  %s2675_s19 = smov 0  }
   0x2   :  { %s2677_s20 = smov 0   ;;  %s2679_s21 = smov 0  }
   0x3   :  { %s2681_s22 = smov 0   ;;  %s2683_s23 = smov 0  }
   0x4 LB: > { %s2343_s24 = sadd.s32 4294967295, %s2636_s23   ;;  %s2344_s25 = sadd.s32 4294967294, %s2636_s23   ;;  %s2636_s23 = sphi %s2683_s23, %s18_s23   ;;  %s2632_s22 = sphi %s2681_s22, %s2939_s22   ;;  %s2628_s21 = sphi %s2679_s21, %s2938_s21   ;;  %s2624_s20 = sphi %s2677_s20, %s2937_s20   ;;  %s2620_s19 = sphi %s2675_s19, %s2936_s19   ;;  %s2616_s18 = sphi %s2673_s18, %s2935_s18  }
   0x5   : > { %s37_s26 = sadd.s32 1, %s2632_s22  ;;  %s180_s27 = sadd.s32 1, %s2624_s20 }
   0x6   : > { %p39_p0 = scmp.ge.s32.totalorder %s37_s26, 2  ;;  %p190_p1 = scmp.ne.s32.totalorder %s2624_s20, %s2620_s19 }
   0x7   : > { %p191_p2 = scmp.eq.s32.totalorder %s2343_s24, 1  ;;  %p196_p3 = scmp.ne.s32.totalorder %s2620_s19, %s2616_s18 }
   0x8   : > { %s2941_s26 = smov (%p39_p0, %s37_s26), 0  ;;  %p197_p5 = scmp.eq.s32.totalorder %s2344_s25, 1 }
   0x9   : > { %p2713_p4 = por %p191_p2, %p190_p1  ;;  %s175_s29 = ssub.s32 %s2632_s22, %s2941_s26 }
   0xa   : > { %p2347_p6 = scmp.ge.s32.totalorder %s2636_s23, 1  ;;  %p178_p7 = scmp.eq.s32.totalorder %s175_s29, 0 }
   0xb   : > { %p2720_p8 = por %p197_p5, %p196_p3  ;;  %p262_p9 = scmp.lt.s32.totalorder %s2636_s23, 3 }
   0xc   : > { %s2726_s6 = scalar_select %p178_p7, %s2624_s20, %s180_s27  }
   0xd   : > { %p263_p10 = pnand %p2347_p6, %p262_p9 }
   0xe   : > { %p313_p11 = scmp.lt.s32.totalorder (!%p263_p10), %s2628_s21, 1  ;;  %s2385_s15 = sshll.u32 (!%p263_p10), %s2628_s21, 7 }
   0xf   : > { %266 = sbr.rel (%p263_p10) target bundleno = 1017 (0x3f9), region = 40  ;;  %s2228_s27 = scalar_lea.hbm (!%p263_p10), %s2932_s5, %s2385_s15 }
  0x14   : > { %vm358_vm0 = vcmask 64512   ;;  %v2638_v0 = vmov 0.0   ;;  %s314_s7 = scalar_select %p313_p11, %s2628_s21, 1  ;;  %vm2639_vm1 = vmmov 0   ;;  %vm349_vm2 = vcmask 7168  }
  0x15   : > { %2415 = vmatprep.subr.mxu0 %v2638_v0  ;;  %359 = vst.msk [vmem:[#allocation4] sm:$0xff] %vm358_vm0, %v2638_v0  ;;  %360 = vst.msk [vmem:[#allocation4 + $0x8] sm:$0xff] %vm358_vm0, %v2638_v0  ;;  %2420 = vmatprep.subr.mxu1 %v2638_v0  ;;  %v2640_v9 = vmov -1e+30   ;;  %v1426_v10 = vlaneseq  ;;  %v2641_v29 = vmov 0   ;;  %vm2198_vm4 = vcmask 261120  }
  0x16   : > { %361 = vst.msk [vmem:[#allocation4 + $0x10] sm:$0xff] %vm358_vm0, %v2638_v0  ;;  %362 = vst.msk [vmem:[#allocation4 + $0x18] sm:$0xff] %vm358_vm0, %v2638_v0  ;;  %2417 = vmatprep.mubr.msk.f32.mxu0 %vm2639_vm1, %v2638_v0  ;;  %2422 = vmatprep.mubr.msk.f32.mxu1 %vm2639_vm1, %v2638_v0  ;;  %s2744_s8 = sshll.u32 %s314_s7, 5 }
  0x17   : > { %s330_s11 = scalar_lea.vmem %s2928_s1, %s2744_s8  ;;  %s320_s14 = scalar_lea.vmem %s2927_s0, %s2744_s8  ;;  %350 = vst.msk [vmem:[#allocation2] sm:$0xff] %vm349_vm2, %v2640_v9  ;;  %351 = vst.msk [vmem:[#allocation2 + $0x8] sm:$0xff] %vm349_vm2, %v2640_v9  ;;  %v1427_v11 = vshrl.u32 %v1426_v10, 7  ;;  %v1429_v12 = vand.u32 127, %v1426_v10  ;;  %2534 = vset.pattern.permute.xlu0 %v2641_v29  ;;  %2535 = vset.pattern.permute.xlu1 %v2641_v29 }
  0x18   : > { %v1117_v1 = vld [vmem:[%s330_s11] sm:$0xff]  ;;  %v1118_v2 = vld [vmem:[%s330_s11 + $0x8] sm:$0xff]  ;;  %v1119_v5 = vld [vmem:[%s330_s11 + $0x10] sm:$0xff]  ;;  %352 = vst.msk [vmem:[#allocation2 + $0x10] sm:$0xff] %vm349_vm2, %v2640_v9  ;;  %s2824_s17 = scalar_lea.vmem %s2929_s2, %s2744_s8  ;;  %s2642_s8 = smov [#allocation5]  }
  0x19   : > { %2416 = vmatpush3.xpose.msk.msra.mxu0 %vm358_vm0, %v1117_v1  ;;  %2421 = vmatpush3.xpose.msk.msra.mxu1 %vm358_vm0, %v1118_v2  ;;  %v1113_v3 = vld [vmem:[%s320_s14] sm:$0xff]  ;;  %v1114_v4 = vld [vmem:[%s320_s14 + $0x8] sm:$0xff]  ;;  %v1120_v6 = vld [vmem:[%s330_s11 + $0x18] sm:$0xff]  ;;  %353 = vst.msk [vmem:[#allocation2 + $0x18] sm:$0xff] %vm349_vm2, %v2640_v9  ;;  %vm1430_vm3 = vcmp.le.s32.totalorder %v1429_v12, %v1427_v11  ;;  %s310_s11 = sand.u32 1, %s2620_s19   ;;  %s2564_s21 = sshll.u32 %s2642_s8, 4  ;;  %s2565_s21 = int_to_ptr.vmem [resolvable:$false] %s2564_s21 }
  0x1a   : > { %2425 = vmatprep.subr.mxu0 %v2638_v0  ;;  %2430 = vmatprep.subr.mxu1 %v2638_v0  ;;  %v1115_v7 = vld [vmem:[%s320_s14 + $0x10] sm:$0xff]  ;;  %v1116_v8 = vld [vmem:[%s320_s14 + $0x18] sm:$0xff]  ;;  %354 = vst.msk [vmem:[#allocation3] sm:$0xff] %vm349_vm2, %v2638_v0  ;;  %355 = vst.msk [vmem:[#allocation3 + $0x8] sm:$0xff] %vm349_vm2, %v2638_v0  ;;  %s2348_s12 = sshll.u32 %s310_s11, 3  ;;  %s2216_s29 = scalar_lea.sflag [#allocation6], %s310_s11 }
  0x1b   : > { %356 = vst.msk [vmem:[#allocation3 + $0x10] sm:$0xff] %vm349_vm2, %v2638_v0  ;;  %357 = vst.msk [vmem:[#allocation3 + $0x18] sm:$0xff] %vm349_vm2, %v2638_v0  ;;  %v1558_v46 = vld [vmem:[%s2824_s17] sm:$0xff]  ;;  %v1559_v47 = vld [vmem:[%s2824_s17 + $0x8] sm:$0xff]  ;;  %s312_s16 = scalar_lea.vmem [#allocation5], %s2348_s12  ;;  %s2566_s9 = scalar_lea.vmem %s2565_s21, 256 }
  0x1c   : > { %2418 = vmatmul.mubr.msk.f32.vlgmr.msra.gmra.mxu0 %vm358_vm0, %v1113_v3  ;;  %2423 = vmatmul.mubr.msk.f32.vlgmr.msra.gmra.mxu1 %vm358_vm0, %v1114_v4  ;;  %v1560_v60 = vld [vmem:[%s2824_s17 + $0x10] sm:$0xff]  ;;  %v1561_v63 = vld [vmem:[%s2824_s17 + $0x18] sm:$0xff]  ;;  %s2230_s17 = sshll.u32 %s312_s16, 4  ;;  %s2231_s17 = int_to_ptr.vmem [resolvable:$true] %s2230_s17 }
  0x1d   : > { %2426 = vmatpush3.xpose.msk.msra.mxu0 %vm358_vm0, %v1119_v5  ;;  %2427 = vmatprep.mubr.msk.f32.mxu0 %vm2639_vm1, %v2638_v0  ;;  %s2560_s7 = scalar_lea.vmem %s2231_s17, 128  ;;  %p2567_p1 = scmp.lt.s32.totalorder %s2231_s17, %s2565_s21 }
  0x1e   : > { %2431 = vmatpush3.xpose.msk.msra.mxu1 %vm358_vm0, %v1120_v6  ;;  %2432 = vmatprep.mubr.msk.f32.mxu1 %vm2639_vm1, %v2638_v0  ;;  %v2790_v30 = vld [vmem:[#allocation2] sm:$0xff]  ;;  %v2795_v33 = vld [vmem:[#allocation2 + $0x8] sm:$0xff]  ;;  %p2561_p12 = scmp.ne.s32.totalorder %s2231_s17, %s2560_s7  ;;  %p2568_p2 = scmp.lt.s32.totalorder %s2566_s9, %s2560_s7 }
  0x1f   : > { %2435 = vmatprep.subr.mxu0 %v2638_v0  ;;  %2440 = vmatprep.subr.mxu1 %v2638_v0  ;;  %v2797_v34 = vld [vmem:[#allocation2 + $0x10] sm:$0xff] }
  0x20   : > { %2428 = vmatmul.mubr.msk.f32.vlgmr.msra.gmra.mxu0 %vm358_vm0, %v1115_v7  ;;  %v2808_v40 = vld [vmem:[#allocation2 + $0x18] sm:$0xff]  ;;  %p2562_p13 = pnand %p2561_p12, %p2713_p4  ;;  %p2569_p3 = por %p2568_p2, %p2567_p1 }
  0x21   : > { %2433 = vmatmul.mubr.msk.f32.vlgmr.msra.gmra.mxu1 %vm358_vm0, %v1116_v8  ;;  %2437 = vmatprep.mubr.msk.f32.mxu0 %vm2639_vm1, %v2638_v0 }
  0x22   : > { %2442 = vmatprep.mubr.msk.f32.mxu1 %vm2639_vm1, %v2638_v0  ;;  %2436 = vmatpush3.msra.mxu0 %v1558_v46  ;;  %p2563_p0 = pneg %p2562_p13 }
  0x23   : > { %2445 = vmatprep.subr.mxu0 %v2638_v0  ;;  %2441 = vmatpush3.msra.mxu1 %v1559_v47  ;;  %v1532_v47 = vld [vmem:[#allocation4 + $0x10] sm:$0xff] }
  0x24   : > { %2450 = vmatprep.subr.mxu1 %v2638_v0  ;;  %p2570_p5 = pnand %p2569_p3, %p2563_p0 }
  0xdc   : > { %v1194_v13 = vpop.f32.mrf.mxu0  ;;  %v1270_v14 = vpop.f32.mrf.mxu1 }
  0xdd   : > { %v1433_v15 = vsel %vm1430_vm3, %v1194_v13, -1e+30  ;;  %v1434_v16 = vsel %vm1430_vm3, %v1270_v14, -1e+30 }
  0xde   : > { %v2419_v17 = vpop.f32.mrf.mxu0  ;;  %v1441_v18 = vsel %vm358_vm0, %v1433_v15, -inf  ;;  %v2424_v19 = vpop.f32.mrf.mxu1  ;;  %v1444_v21 = vsel %vm358_vm0, %v1434_v16, -inf }
  0xdf   : > { %1442 = vmax.xlane.f32.xlu0 %v1441_v18  ;;  %v1502_v18 = vld [vmem:[#allocation3 + $0x8] sm:$0xff] }
  0xe0   : > { %v1346_v20 = vpop.f32.mrf.mxu0 }
  0xe1   : > { %v1435_v22 = vsel %vm1430_vm3, %v1346_v20, -1e+30  ;;  %v1422_v23 = vpop.f32.mrf.mxu1 }
  0xe2   : > { %v2429_v24 = vpop.f32.mrf.mxu0  ;;  %v1436_v25 = vsel %vm1430_vm3, %v1422_v23, -1e+30  ;;  %v1447_v26 = vsel %vm358_vm0, %v1435_v22, -inf }
  0xe3   : > { %1445 = vmax.xlane.f32.xlu0 %v1444_v21  ;;  %1448 = vmax.xlane.f32.xlu1 %v1447_v26  ;;  %v2434_v27 = vpop.f32.mrf.mxu1  ;;  %v1450_v28 = vsel %vm358_vm0, %v1436_v25, -inf  ;;  %v1504_v26 = vld [vmem:[#allocation3 + $0x18] sm:$0xff] }
  0xe7   : > { %1451 = vmax.xlane.f32.xlu1 %v1450_v28 }
 0x168   : > { %v1443_v31 = vpop.xlane.xlu0 %1442 }
 0x169   : > { %v2793_v32 = vmax.f32 %v2790_v30, %v1443_v31 }
 0x16b   : > { %v1457_v35 = vsub.f32 %v2790_v30, %v2793_v32  ;;  %1862 = vst.msk [vmem:[#allocation2] sm:$0xff] %vm349_vm2, %v2793_v32  ;;  %1471 = vperm.xlu0 %2534, %v2793_v32  }
 0x16c   : > { %v1446_v36 = vpop.xlane.xlu0 %1445  ;;  %v1449_v37 = vpop.xlane.xlu1 %1448 }
 0x16d   : > { %v1454_v38 = vmax.f32 %v2795_v33, %v1446_v36  ;;  %v2806_v39 = vmax.f32 %v2797_v34, %v1449_v37  ;;  %v1461_v5 = vmul.f32 1.442695, %v1457_v35  ;;  %v1903_v36 = vld [vmem:[%s2930_s3 + $0x8] sm:$0xff]  ;;  %v1530_v37 = vld [vmem:[#allocation4] sm:$0xff] }
 0x16f   : > { %v1458_v41 = vsub.f32 %v2795_v33, %v1454_v38  ;;  %1863 = vst.msk [vmem:[#allocation2 + $0x8] sm:$0xff] %vm349_vm2, %v1454_v38  ;;  %1476 = vperm.xlu1 %2535, %v1454_v38   ;;  %v1459_v42 = vsub.f32 %v2797_v34, %v2806_v39  ;;  %1864 = vst.msk [vmem:[#allocation2 + $0x10] sm:$0xff] %vm349_vm2, %v2806_v39  ;;  %v1902_v34 = vld [vmem:[%s2930_s3] sm:$0xff] }
 0x170   : > { %v1452_v43 = vpop.xlane.xlu1 %1451 }
 0x171   : > { %v1456_v44 = vmax.f32 %v2808_v40, %v1452_v43  ;;  %v1463_v7 = vmul.f32 1.442695, %v1458_v41  ;;  %v1465_v9 = vmul.f32 1.442695, %v1459_v42 }
 0x173   : > { %1481 = vperm.xlu1 %2535, %v2806_v39   ;;  %v1460_v45 = vsub.f32 %v2808_v40, %v1456_v44  ;;  %1865 = vst.msk [vmem:[#allocation2 + $0x18] sm:$0xff] %vm349_vm2, %v1456_v44  ;;  %v1531_v40 = vld [vmem:[#allocation4 + $0x8] sm:$0xff] }
 0x175   : > { %v1467_v10 = vmul.f32 1.442695, %v1460_v45 }
 0x177   : > { %1486 = vperm.xlu1 %2535, %v1456_v44  }
 0x1e6   : > { %v1472_v48 = vpop.permute.xlu0 %1471 }
 0x1e7   : > { %v1489_v49 = vsub.f32 %v1433_v15, %v1472_v48  ;;  %v1501_v15 = vld [vmem:[#allocation3] sm:$0xff] }
 0x1e9   : > { %v1493_v50 = vmul.f32 1.442695, %v1489_v49 }
 0x1ea   : > { %v1477_v51 = vpop.permute.xlu1 %1476 }
 0x1eb   : > { %2536 = vpow2.f32 %v1493_v50  ;;  %v1490_v52 = vsub.f32 %v1434_v16, %v1477_v51 }
 0x1ed   : > { %v1495_v53 = vmul.f32 1.442695, %v1490_v52  ;;  %v1533_v52 = vld [vmem:[#allocation4 + $0x18] sm:$0xff] }
 0x1ee   : > { %v1482_v54 = vpop.permute.xlu1 %1481 }
 0x1ef   : > { %2538 = vpow2.f32 %v1495_v53  ;;  %v1491_v55 = vsub.f32 %v1435_v22, %v1482_v54  ;;  %v1503_v22 = vld [vmem:[#allocation3 + $0x10] sm:$0xff] }
 0x1f1   : > { %v1497_v56 = vmul.f32 1.442695, %v1491_v55 }
 0x1f2   : > { %v1487_v57 = vpop.permute.xlu1 %1486 }
 0x1f3   : > { %2540 = vpow2.f32 %v1497_v56  ;;  %v1492_v58 = vsub.f32 %v1436_v25, %v1487_v57 }
 0x1f5   : > { %v1499_v59 = vmul.f32 1.442695, %v1492_v58 }
 0x1f7   : > { %2542 = vpow2.f32 %v1499_v59 }
 0x1f8   : > { %v2537_v61 = vpop.eup %2536  ;;  %2544 = vpow2.f32 %v1461_v5  ;;  %v1904_v5 = vld [vmem:[%s2930_s3 + $0x10] sm:$0xff] }
 0x1f9   : > { %2438 = vmatmul.mubr.msk.f32.vlgmr.msra.gmra.mxu0 %vm358_vm0, %v2537_v61  ;;  %v1509_v62 = vsel %vm358_vm0, %v2537_v61, 0.0  ;;  %2546 = vpow2.f32 %v1463_v7 }
 0x1fa   : > { %1510 = vadd.xlane.f32.xlu1 %v1509_v62  ;;  %2446 = vmatpush3.msra.mxu0 %v1560_v60  ;;  %2548 = vpow2.f32 %v1465_v9  ;;  %v1905_v9 = vld [vmem:[%s2930_s3 + $0x18] sm:$0xff] }
 0x1fb   : > { %2447 = vmatprep.mubr.msk.f32.mxu0 %vm2639_vm1, %v2638_v0  ;;  %2455 = vmatprep.subr.mxu0 %v2638_v0  ;;  %2550 = vpow2.f32 %v1467_v10 }
 0x1fc   : > { %v2539_v1 = vpop.eup %2538 }
 0x1fd   : > { %2443 = vmatmul.mubr.msk.f32.vlgmr.msra.gmra.mxu1 %vm358_vm0, %v2539_v1  ;;  %v1512_v2 = vsel %vm358_vm0, %v2539_v1, 0.0 }
 0x1fe   : > { %1513 = vadd.xlane.f32.xlu0 %v1512_v2  ;;  %2451 = vmatpush3.msra.mxu1 %v1561_v63 }
 0x1ff   : > { %2452 = vmatprep.mubr.msk.f32.mxu1 %vm2639_vm1, %v2638_v0  ;;  %2460 = vmatprep.subr.mxu1 %v2638_v0 }
 0x200   : > { %v2541_v3 = vpop.eup %2540 }
 0x201   : > { %2448 = vmatmul.mubr.msk.f32.vlgmr.msra.gmra.mxu0 %vm358_vm0, %v2541_v3  ;;  %v1515_v4 = vsel %vm358_vm0, %v2541_v3, 0.0 }
 0x202   : > { %1516 = vadd.xlane.f32.xlu1 %v1515_v4  ;;  %2457 = vmatprep.mubr.msk.f32.mxu0 %vm2639_vm1, %v2638_v0 }
 0x203   : > { %2456 = vmatpush3.msra.mxu0 %v1902_v34 }
 0x204   : > { %v2543_v6 = vpop.eup %2542  ;;  %2465 = vmatprep.subr.mxu0 %v2638_v0 }
 0x205   : > { %2453 = vmatmul.mubr.msk.f32.vlgmr.msra.gmra.mxu1 %vm358_vm0, %v2543_v6  ;;  %v1518_v8 = vsel %vm358_vm0, %v2543_v6, 0.0  ;;  %v2545_v11 = vpop.eup %2544 }
 0x206   : > { %1519 = vadd.xlane.f32.xlu1 %v1518_v8  ;;  %2462 = vmatprep.mubr.msk.f32.mxu1 %vm2639_vm1, %v2638_v0  ;;  %v2547_v12 = vpop.eup %2546  ;;  %v1505_v16 = vmul.f32 %v2545_v11, %v1501_v15 }
 0x207   : > { %v2549_v13 = vpop.eup %2548  ;;  %v1506_v20 = vmul.f32 %v2547_v12, %v1502_v18  ;;  %2461 = vmatpush3.msra.mxu1 %v1903_v36 }
 0x208   : > { %v2551_v14 = vpop.eup %2550  ;;  %v1507_v24 = vmul.f32 %v2549_v13, %v1503_v22  ;;  %2470 = vmatprep.subr.mxu1 %v2638_v0 }
 0x209   : > { %v1508_v29 = vmul.f32 %v2551_v14, %v1504_v26 }
 0x214   : > { %1536 = vperm.xlu0 %2534, %v2545_v11  }
 0x217   : > { %1541 = vperm.xlu1 %2535, %v2547_v12  }
 0x218   : > { %1546 = vperm.xlu0 %2534, %v2549_v13  }
 0x21c   : > { %1551 = vperm.xlu0 %2534, %v2551_v14  }
 0x283   : > { %v1511_v17 = vpop.xlane.xlu1 %1510 }
 0x284   : > { %v1521_v19 = vadd.f32 %v1511_v17, %v1505_v16 }
 0x286   : > { %1526 = vst.msk [vmem:[#allocation3] sm:$0xff] %vm349_vm2, %v1521_v19 }
 0x287   : > { %v1514_v21 = vpop.xlane.xlu0 %1513 }
 0x288   : > { %v1522_v23 = vadd.f32 %v1514_v21, %v1506_v20 }
 0x28a   : > { %1527 = vst.msk [vmem:[#allocation3 + $0x8] sm:$0xff] %vm349_vm2, %v1522_v23 }
 0x28b   : > { %v1517_v25 = vpop.xlane.xlu1 %1516 }
 0x28c   : > { %v1523_v27 = vadd.f32 %v1517_v25, %v1507_v24 }
 0x28d   : > { %v1870_v28 = vld [vmem:[#allocation3] sm:$0xff] }
 0x28e   : > { %1528 = vst.msk [vmem:[#allocation3 + $0x10] sm:$0xff] %vm349_vm2, %v1523_v27  ;;  %1876 = vperm.xlu1 %2535, %v1870_v28   ;;  %v2383_v28 = vld [vmem:[%s2931_s4] ss:$0 sm:$0xff] }
 0x28f   : > { %v1520_v30 = vpop.xlane.xlu1 %1519  ;;  %v1537_v38 = vpop.permute.xlu0 %1536 }
 0x290   : > { %v1524_v31 = vadd.f32 %v1520_v30, %v1508_v29  ;;  %v1554_v39 = vmul.f32 %v1537_v38, %v1530_v37 }
 0x291   : > { %v1871_v32 = vld [vmem:[#allocation3 + $0x8] sm:$0xff] }
 0x292   : > { %1529 = vst.msk [vmem:[#allocation3 + $0x18] sm:$0xff] %vm349_vm2, %v1524_v31  ;;  %1881 = vperm.xlu1 %2535, %v1871_v32  }
 0x293   : > { %v1542_v41 = vpop.permute.xlu1 %1541  ;;  %v1547_v44 = vpop.permute.xlu0 %1546 }
 0x294   : > { %v1555_v46 = vmul.f32 %v1542_v41, %v1531_v40  ;;  %v1556_v51 = vmul.f32 %v1547_v44, %v1532_v47 }
 0x295   : > { %v1872_v33 = vld [vmem:[#allocation3 + $0x10] sm:$0xff] }
 0x296   : > { %1886 = vperm.xlu1 %2535, %v1872_v33  }
 0x297   : > { %v1552_v53 = vpop.permute.xlu0 %1551 }
 0x298   : > { %v1557_v57 = vmul.f32 %v1552_v53, %v1533_v52 }
 0x299   : > { %v1873_v35 = vld [vmem:[#allocation3 + $0x18] sm:$0xff] }
 0x29a   : > { %1891 = vperm.xlu1 %2535, %v1873_v35  }
 0x2b9   : > { %v1631_v42 = vpop.f32.mrf.mxu0 }
 0x2ba   : > { %v1854_v43 = vadd.f32 %v1631_v42, %v1554_v39 }
 0x2bb   : > { %v2439_v45 = vpop.f32.mrf.mxu0 }
 0x2bc   : > { %1858 = vst.msk [vmem:[#allocation4] sm:$0xff] %vm358_vm0, %v1854_v43 }
 0x2bd   : > { %v1704_v48 = vpop.f32.mrf.mxu1 }
 0x2be   : > { %v1855_v49 = vadd.f32 %v1704_v48, %v1555_v46 }
 0x2bf   : > { %v2444_v50 = vpop.f32.mrf.mxu1 }
 0x2c0   : > { %1859 = vst.msk [vmem:[#allocation4 + $0x8] sm:$0xff] %vm358_vm0, %v1855_v49 }
 0x2c1   : > { %v1777_v54 = vpop.f32.mrf.mxu0 }
 0x2c2   : > { %v1856_v55 = vadd.f32 %v1777_v54, %v1556_v51 }
 0x2c3   : > { %v2449_v56 = vpop.f32.mrf.mxu0  ;;  %v1866_v3 = vld [vmem:[#allocation4] sm:$0xff] }
 0x2c4   : > { %1860 = vst.msk [vmem:[#allocation4 + $0x10] sm:$0xff] %vm358_vm0, %v1856_v55 }
 0x2c5   : > { %v1850_v58 = vpop.f32.mrf.mxu1 }
 0x2c6   : > { %v1857_v59 = vadd.f32 %v1850_v58, %v1557_v57 }
 0x2c7   : > { %v2454_v60 = vpop.f32.mrf.mxu1  ;;  %v1867_v7 = vld [vmem:[#allocation4 + $0x8] sm:$0xff] }
 0x2c8   : > { %1861 = vst.msk [vmem:[#allocation4 + $0x18] sm:$0xff] %vm358_vm0, %v1857_v59 }
 0x2cb   : > { %v1868_v11 = vld [vmem:[#allocation4 + $0x10] sm:$0xff] }
 0x2cf   : > { %v1869_v14 = vld [vmem:[#allocation4 + $0x18] sm:$0xff] }
 0x309   : > { %v1877_v61 = vpop.permute.xlu1 %1876 }
 0x30a   : > { %2552 = vrcp.f32 %v1877_v61 }
 0x30d   : > { %v1882_v62 = vpop.permute.xlu1 %1881 }
 0x30e   : > { %2554 = vrcp.f32 %v1882_v62 }
 0x311   : > { %v1887_v63 = vpop.permute.xlu1 %1886 }
 0x312   : > { %2556 = vrcp.f32 %v1887_v63 }
 0x315   : > { %v1892_v1 = vpop.permute.xlu1 %1891 }
 0x316   : > { %2558 = vrcp.f32 %v1892_v1 }
 0x317   : > { %v2553_v2 = vpop.eup %2552 }
 0x318   : > { %v1895_v4 = vmul.f32 %v2553_v2, %v1866_v3 }
 0x31a   : > { %2458 = vmatmul.mubr.msk.f32.vlgmr.msra.gmra.mxu0 %vm358_vm0, %v1895_v4 }
 0x31b   : > { %v2555_v6 = vpop.eup %2554  ;;  %2466 = vmatpush3.msra.mxu0 %v1904_v5  ;;  %2467 = vmatprep.mubr.msk.f32.mxu0 %vm2639_vm1, %v2638_v0 }
 0x31c   : > { %v1897_v8 = vmul.f32 %v2555_v6, %v1867_v7 }
 0x31e   : > { %2463 = vmatmul.mubr.msk.f32.vlgmr.msra.gmra.mxu1 %vm358_vm0, %v1897_v8 }
 0x31f   : > { %v2557_v10 = vpop.eup %2556  ;;  %2471 = vmatpush3.msra.mxu1 %v1905_v9  ;;  %2472 = vmatprep.mubr.msk.f32.mxu1 %vm2639_vm1, %v2638_v0 }
 0x320   : > { %v1899_v12 = vmul.f32 %v2557_v10, %v1868_v11 }
 0x322   : > { %2468 = vmatmul.mubr.msk.f32.vlgmr.msra.gmra.mxu0 %vm358_vm0, %v1899_v12 }
 0x323   : > { %v2559_v13 = vpop.eup %2558 }
 0x324   : > { %v1901_v15 = vmul.f32 %v2559_v13, %v1869_v14 }
 0x326   : > { %2473 = vmatmul.mubr.msk.f32.vlgmr.msra.gmra.mxu1 %vm358_vm0, %v1901_v15 }
 0x3da   : > { %v1975_v16 = vpop.f32.mrf.mxu0 }
 0x3db   : > { %v2199_v0 = vsel %vm2198_vm4, %v1975_v16, 0.0 }
 0x3dc   : > { %v2459_v17 = vpop.f32.mrf.mxu0 }
 0x3de   : > { %v2048_v18 = vpop.f32.mrf.mxu1 }
 0x3df   : > { %v2200_v20 = vsel %vm2198_vm4, %v2048_v18, 0.0 }
 0x3e0   : > { %v2464_v19 = vpop.f32.mrf.mxu1  ;;  %v2201_v23 = vadd.f32 %v2200_v20, %v2199_v0 }
 0x3e2   : > { %v2121_v21 = vpop.f32.mrf.mxu0 }
 0x3e3   : > { %v2202_v22 = vsel %vm2198_vm4, %v2121_v21, 0.0 }
 0x3e4   : > { %v2469_v24 = vpop.f32.mrf.mxu0  ;;  %v2203_v25 = vadd.f32 %v2202_v22, %v2201_v23 }
 0x3e6   : > { %v2194_v26 = vpop.f32.mrf.mxu1 }
 0x3e7   : > { %v2204_v27 = vsel %vm2198_vm4, %v2194_v26, 0.0 }
 0x3e8   : > { %v2205_v29 = vadd.f32 %v2204_v27, %v2203_v25  ;;  %v2474_v30 = vpop.f32.mrf.mxu1 }
 0x3ea   : > { %v2213_v31 = vadd.f32 %v2383_v28, %v2205_v29 }
 0x3ec   : > { %2214 = vst.msk [vmem:[%s312_s16] sm:$0xff] %vm2198_vm4, %v2213_v31 }
 0x3ed   : > { %2573 = shalt.err (!%p2570_p5)
}
 0x3ee   : > { %s2574_s10 = scalar_lea.hbm %s2228_s27, 128  ;;  %s2578_s13 = scalar_lea.hbm %s2932_s5, 256 }
 0x3ef   : > { %p2575_p6 = scmp.ne.s32.totalorder %s2228_s27, %s2574_s10  ;;  %p2579_p10 = scmp.lt.s32.totalorder %s2228_s27, %s2932_s5 }
 0x3f0   : > { %p2580_p11 = scmp.lt.s32.totalorder %s2578_s13, %s2574_s10 }
 0x3f1   : > { %p2576_p7 = pnand %p2575_p6, %p2713_p4 }
 0x3f2   : > { %p2581_p12 = por %p2580_p11, %p2579_p10 }
 0x3f3   : > { %p2577_p9 = pneg %p2576_p7 }
 0x3f5   : > { %p2582_p13 = pnand %p2581_p12, %p2577_p9 }
 0x3f7   : > { %2585 = shalt.err (!%p2582_p13)
}
 0x3f8   : > { %2475 = dma.vmem_to_hbm [thread:$0]  (%p2713_p4), %s2231_s17, 128, %s2228_s27, %s2216_s29  }
 0x3f9 PF: > { %p2481_p0 = scmp.ge.s32.totalorder %s2636_s23, 2  ;;  %s2242_s16 = sand.u32 1, %s2616_s18  }
 0x3fa   : > { %s2243_s24 = scalar_lea.sflag [#allocation6], %s2242_s16 }
 0x3fb   : > { %p2478_p1 = pnand %p2481_p0, %p2720_p8 }
 0x3fd   : > { %p2479_p2 = pneg %p2478_p1 }
 0x3ff   : > { %2611 = dma.done.wait (%p2479_p2), %s2243_s24, 128  }
 0x400   : > { %2613 = vsyncadd (%p2479_p2), %s2243_s24, 4294967168  ;;  %s18_s23 = sadd.s32 1, %s2636_s23   ;;  %s2935_s18 = smov %s2620_s19 }
 0x401   : > { %p15_p3 = scmp.ge.s32.totalorder %s18_s23, 4   ;;  %s2936_s19 = smov %s2624_s20 }
 0x402   : > { %s2937_s20 = smov %s2726_s6  ;;  %s2938_s21 = smov %s2632_s22 }
 0x403   : > { %s2939_s22 = smov %s2941_s26  ;;  %17 = sbr.rel (!%p15_p3) target bundleno = 4 (0x4), region = 93 }
 0x408   :  { %2248 = vsyncpa [#allocation6], 1 }
 0x409   :  { %2250 = vsyncpa [#allocation6 + $0x1], 1 }

</bundles_post_ra>
